<compile_context>
chip_gen: v5e
topology: v5e:2x2
jax: 0.10.0
libtpu: 0.0.40
codegen_flags: <defaults>
</compile_context>

<pallas_src>
import math
import functools

import jax
import jax.numpy as jnp
from jax.scipy.linalg import block_diag
from jax.experimental import pallas as pl
from jax.experimental.pallas import tpu as pltpu


# ------------------------------- helpers ------------------------------------

def _pick_tile(dim, align, pref):
    """Largest divisor of `dim` that is a multiple of `align` and <= `pref`.
    Falls back to the full dim (a full-extent block is always legal) -> no padding/slicing."""
    if dim >= align and dim % align == 0:
        t = (min(pref, dim) // align) * align
        while t >= align:
            if dim % t == 0:
                return t
            t -= align
    return dim


# ------------- fused prototype projection + K|V projection (MXU) ------------

def _proto_kv_kernel(wp_ref, emb_ref, bp_ref, wkv_ref, bkv_ref, o_ref, acc_ref):
    """kv = (w_proto @ emb + b_proto[:, None]) @ w_kv + b_kv, vocab (K) axis streamed."""
    @pl.when(pl.program_id(1) == 0)
    def _():
        acc_ref[...] = jnp.zeros_like(acc_ref)

    acc_ref[...] += jnp.dot(wp_ref[...], emb_ref[...],
                            preferred_element_type=jnp.float32)

    @pl.when(pl.program_id(1) == pl.num_programs(1) - 1)
    def _():
        src = (acc_ref[...] + bp_ref[...]).astype(jnp.bfloat16)          # [ts, d_llm]
        kv = jnp.dot(src, wkv_ref[...].astype(jnp.bfloat16),
                     preferred_element_type=jnp.float32) + bkv_ref[...]
        o_ref[...] = kv.astype(o_ref.dtype)


def pallas_proto_kv(w_proto, emb, b_proto, w_kv, b_kv):
    """w_proto: [S, vocab] bf16, emb: [vocab, d_llm] bf16, b_proto: [S],
       w_kv: [d_llm, 2*HE], b_kv: [2*HE]  ->  kv: [S, 2*HE] f32."""
    S, V = w_proto.shape
    _, d_llm = emb.shape
    N = w_kv.shape[1]
    ts = _pick_tile(S, 8, max(8, S // 2))      # >=2 parallel steps when possible (v7x: 2 TCs)
    tk = _pick_tile(V, 128, 512)               # stream the vocab axis (mem-bound at prod sizes)
    grid = (S // ts, V // tk)
    return pl.pallas_call(
        _proto_kv_kernel,
        out_shape=jax.ShapeDtypeStruct((S, N), jnp.float32),
        grid=grid,
        in_specs=[
            pl.BlockSpec((ts, tk), lambda i, k: (i, k)),
            pl.BlockSpec((tk, d_llm), lambda i, k: (k, 0)),
            pl.BlockSpec((ts, 1), lambda i, k: (i, 0)),
            pl.BlockSpec((d_llm, N), lambda i, k: (0, 0)),   # constant -> fetched once
            pl.BlockSpec((1, N), lambda i, k: (0, 0)),
        ],
        out_specs=pl.BlockSpec((ts, N), lambda i, k: (i, 0)),
        scratch_shapes=[pltpu.VMEM((ts, d_llm), jnp.float32)],
        compiler_params=pltpu.CompilerParams(
            dimension_semantics=("parallel", "arbitrary"),
            vmem_limit_bytes=32 * 1024 * 1024),
    )(w_proto, emb, b_proto.reshape(S, 1), w_kv, b_kv.reshape(1, N))


# ------- fused TokenEmbedding conv + ReprogrammingLayer (one kernel/batch) ---

def _conv_reprog_kernel(x_ref, wc_ref, bc_ref, wq_ref, bq_ref, kbd_ref, vbd_ref,
                        seg_ref, wo_ref, bo_ref, o_ref, *, scale):
    # Circular Conv1d as ONE im2col matmul (3 taps packed into the contraction dim).
    x = x_ref[0].astype(jnp.bfloat16)                                        # [Lt, 3C]
    t = jnp.dot(x, wc_ref[...].astype(jnp.bfloat16),
                preferred_element_type=jnp.float32) + bc_ref[...]            # [Lt, d_model]
    # Q projection; 1/sqrt(E) folded into q (equivalent to scaling the scores).
    q = (jnp.dot(t.astype(jnp.bfloat16), wq_ref[...].astype(jnp.bfloat16),
                 preferred_element_type=jnp.float32) + bq_ref[...]) * scale  # [Lt, HE]
    # All heads' scores in one full-width MXU op via block-diagonal K^T.
    s = jnp.dot(q.astype(jnp.bfloat16), kbd_ref[...],
                preferred_element_type=jnp.float32)                          # [Lt, H*S]
    # Segmented (per-head) softmax without lane slicing or concatenation:
    #   softmax is shift-invariant, so the global row max is a valid stabilizer; the
    #   per-segment denominators come from one matmul with a block-diagonal ones matrix
    #   (already broadcast to every lane of its segment).
    m = jnp.max(s, axis=-1, keepdims=True)
    p = jnp.exp(s - m)
    denom = jnp.dot(p, seg_ref[...], preferred_element_type=jnp.float32)     # [Lt, H*S]
    a = p * pl.reciprocal(denom, approx=True)
    # All heads' A @ V in one MXU op via block-diagonal V, then the output projection.
    pv = jnp.dot(a.astype(jnp.bfloat16), vbd_ref[...],
                 preferred_element_type=jnp.float32)                         # [Lt, HE]
    o = jnp.dot(pv.astype(jnp.bfloat16), wo_ref[...].astype(jnp.bfloat16),
                preferred_element_type=jnp.float32) + bo_ref[...]            # [Lt, d_llm]
    o_ref[0] = o.astype(o_ref.dtype)


def pallas_conv_reprog(x_im2col, wc, bc, wq, bq, kbd, vbd, seg_ones, wo, bo, *, n_heads):
    """x_im2col: [B, Lt, 3*patch_len]; wc: [3*patch_len, d_model]; wq: [d_model, HE];
       kbd: [HE, H*S] block-diag K^T (bf16); vbd: [H*S, HE] block-diag V (bf16);
       seg_ones: [H*S, H*S] block-diag ones (f32); wo: [HE, d_llm] -> [B, Lt, d_llm] f32."""
    B, Lt, C3 = x_im2col.shape
    d_model = wc.shape[1]
    HE = wq.shape[1]
    HS = kbd.shape[1]
    d_llm = wo.shape[1]
    E = HE // n_heads
    kernel = functools.partial(_conv_reprog_kernel, scale=1.0 / math.sqrt(E))
    return pl.pallas_call(
        kernel,
        out_shape=jax.ShapeDtypeStruct((B, Lt, d_llm), jnp.float32),
        grid=(B,),
        in_specs=[
            pl.BlockSpec((1, Lt, C3), lambda b: (b, 0, 0)),
            pl.BlockSpec((C3, d_model), lambda b: (0, 0)),    # constant blocks -> fetched once
            pl.BlockSpec((1, d_model), lambda b: (0, 0)),
            pl.BlockSpec((d_model, HE), lambda b: (0, 0)),
            pl.BlockSpec((1, HE), lambda b: (0, 0)),
            pl.BlockSpec((HE, HS), lambda b: (0, 0)),
            pl.BlockSpec((HS, HE), lambda b: (0, 0)),
            pl.BlockSpec((HS, HS), lambda b: (0, 0)),
            pl.BlockSpec((HE, d_llm), lambda b: (0, 0)),
            pl.BlockSpec((1, d_llm), lambda b: (0, 0)),
        ],
        out_specs=pl.BlockSpec((1, Lt, d_llm), lambda b: (b, 0, 0)),
        compiler_params=pltpu.CompilerParams(
            dimension_semantics=("parallel",),
            vmem_limit_bytes=32 * 1024 * 1024),
    )(x_im2col, wc, bc.reshape(1, d_model), wq, bq.reshape(1, HE),
      kbd, vbd, seg_ones, wo, bo.reshape(1, d_llm))


# ----------------------------- patching glue ---------------------------------

def patch_im2col(x, cfg):
    """x: [B, n_vars, seq_len] -> circular-conv im2col input [B, n_vars*num_patches, 3*patch_len]."""
    B, n_vars, seq_len = x.shape
    plen, stride = cfg["patch_len"], cfg["stride"]

    # ReplicationPad1d((0, stride)): repeat the last time step `stride` times.
    x_pad = jnp.concatenate([x, jnp.repeat(x[..., -1:], stride, axis=-1)], axis=-1)
    total = x_pad.shape[-1]
    num_patches = (total - plen) // stride + 1

    # unfold(-1, patch_len, stride) -> [B, n_vars, num_patches, patch_len]
    idx = jnp.arange(num_patches)[:, None] * stride + jnp.arange(plen)[None, :]
    x_unf = x_pad[:, :, idx]

    # Reference does `.contiguous().view(-1, patch_len, num_patches)` — a raw row-major
    # reinterpret (NOT a transpose).  Reproduced exactly as written in the spec.
    x_ci = x_unf.reshape(B * n_vars, plen, num_patches)       # [BN, C=patch_len, L=num_patches]
    x_t = jnp.transpose(x_ci, (0, 2, 1))                      # [BN, L, C]
    # Conv1d(kernel=3, padding=1, padding_mode='circular'): wrap one step on each side of L,
    # then gather the 3 taps per output position -> [BN, L, 3, C] -> [B, n_vars*L, 3C].
    x_circ = jnp.concatenate([x_t[:, -1:, :], x_t, x_t[:, :1, :]], axis=1)   # [BN, L+2, C]
    taps = jnp.arange(num_patches)[:, None] + jnp.arange(3)[None, :]         # [L, 3]
    x_im = x_circ[:, taps, :].reshape(B, n_vars * num_patches, 3 * plen)
    return x_im, n_vars, num_patches


# ----------------------------------- model -----------------------------------

def forecast(params, x_enc, prompt_tokens, cfg):
    """x_enc: [B, seq_len, n_vars]; prompt_tokens: [B, prompt_len] int32 -> [B, pred_len]."""
    H = cfg["n_heads"]

    # ---- fused prototype projection + K|V projection (one kernel, one pass over the table)
    kv = pallas_proto_kv(params["w_proto"], params["embeddings"], params["b_proto"],
                         params["w_kv"], params["b_kv"])                   # [S, 2*HE] f32
    S = kv.shape[0]
    HE = kv.shape[1] // 2
    E = HE // H

    # Block-diagonal packing of all heads' K^T / V (batch-independent, built once per forward).
    # TODO(synk): at production num_prototype (~1000), stream K/V over an S grid axis with an
    # online softmax instead of block-diagonal packing (which would be mostly zeros there).
    k_bd = block_diag(*[kv[:, h * E:(h + 1) * E].T for h in range(H)]).astype(jnp.bfloat16)  # [HE, H*S]
    v_bd = block_diag(*[kv[:, HE + h * E: HE + (h + 1) * E] for h in range(H)]).astype(jnp.bfloat16)  # [H*S, HE]
    seg_id = jnp.arange(H * S) // S
    seg_ones = (seg_id[:, None] == seg_id[None, :]).astype(jnp.float32)    # [H*S, H*S]

    # ---- prompt embedding lookup (llm_model.get_input_embeddings()(prompt_tokens))
    prompt_emb = jnp.take(params["embeddings"], prompt_tokens, axis=0).astype(jnp.float32)

    # ---- patching + circular-conv im2col (tiny XLA gather glue)
    x = jnp.transpose(x_enc, (0, 2, 1))                                    # [B, n_vars, seq_len]
    x_im2col, n_vars, num_patches = patch_im2col(x, cfg)                   # [B, n_vars*L, 3*patch_len]

    # ---- fused TokenEmbedding conv + ReprogrammingLayer (Q proj + packed attention + Wo)
    # dropout layers are eval-mode identities.
    ts_enc = pallas_conv_reprog(x_im2col, params["conv_w"], params["conv_b"],
                                params["wq"], params["bq"], k_bd, v_bd, seg_ones,
                                params["wo"], params["bo"], n_heads=H)     # [B, L_tot, d_llm]

    enc_out = jnp.concatenate([prompt_emb, ts_enc], axis=1)                # [B, P+L_tot, d_llm]

    # TODO(synk): frozen HF AutoModelForCausalLM forward (hidden_states[-1]) and the tokenizer
    # have no Pallas equivalent; the LLM body is treated as identity so the downstream
    # slicing / projection semantics and shapes are preserved.
    hidden = enc_out

    P = prompt_tokens.shape[1]
    dec = hidden[:, P:, :][:, -1, :cfg["d_ff"]]                            # last TS token, [:d_ff]
    # Tiny (B x d_ff x pred_len) projection — plain XLA dot, not worth a kernel launch.
    out = jnp.dot(dec, params["w_out"]) + params["b_out"]                  # [B, pred_len]
    # TODO(synk): timeLLM.forward then slices `dec_out[:, -pred_len:, :]` on this 2-D tensor,
    # which errors in PyTorch itself; we return the forecast [B, pred_len].
    return out


# ----------------------------- parameter init --------------------------------

def init_params(key, cfg):
    plen, d_model, H = cfg["patch_len"], cfg["d_model"], cfg["n_heads"]
    dk = cfg["d_ff"]                                   # d_keys == d_ff (as wired in timeLLM)
    d_llm, vocab = cfg["token_dim"], cfg["vocab"]
    nproto, pred = cfg["num_proto"], cfg["pred_len"]
    HE = H * dk
    ks = iter(jax.random.split(key, 16))
    f32 = jnp.float32

    def kaiming(k, shape, fan_in):
        return jax.random.normal(k, shape, f32) * math.sqrt(2.0 / fan_in)

    def lin_t(k, in_f, out_f):
        """nn.Linear(in_f, out_f) init, returned pre-transposed as ([in_f, out_f], [out_f])."""
        kw, kb = jax.random.split(k)
        s = 1.0 / math.sqrt(in_f)
        w = jax.random.normal(kw, (out_f, in_f), f32) * s
        b = jax.random.normal(kb, (out_f,), f32) * s
        return jnp.transpose(w), b

    params = {}
    # TokenEmbedding conv: torch layout [d_model, C, 3]; stored flattened as [3*C, d_model]
    # with flat[t*C + c, d] = w[d, c, t] (matches the im2col tap ordering).
    w_conv = kaiming(next(ks), (d_model, plen, 3), plen * 3)
    params["conv_w"] = jnp.transpose(w_conv, (2, 1, 0)).reshape(3 * plen, d_model)
    params["conv_b"] = jnp.zeros((d_model,), f32)
    # prototype: Linear(vocab_size, num_prototype) — torch layout [nproto, vocab], bf16 (module dtype)
    kw, kb = jax.random.split(next(ks))
    s = 1.0 / math.sqrt(vocab)
    params["w_proto"] = (jax.random.normal(kw, (nproto, vocab), f32) * s).astype(jnp.bfloat16)
    params["b_proto"] = jax.random.normal(kb, (nproto,), f32) * s
    # ReprogrammingLayer (weights pre-transposed [K, N]; K and V fused)
    params["wq"], params["bq"] = lin_t(next(ks), d_model, HE)
    wk, bk = lin_t(next(ks), d_llm, HE)
    wv, bv = lin_t(next(ks), d_llm, HE)
    params["w_kv"] = jnp.concatenate([wk, wv], axis=1)        # [d_llm, 2*HE]
    params["b_kv"] = jnp.concatenate([bk, bv], axis=0)
    params["wo"], params["bo"] = lin_t(next(ks), HE, d_llm)
    # output_projection: kaiming_normal fan_in = d_ff; pre-transposed [d_ff, pred]
    params["w_out"] = jnp.transpose(kaiming(next(ks), (pred, dk), dk))
    params["b_out"] = jnp.zeros((pred,), f32)
    # frozen LLM input-embedding table (bf16, like the torch module)
    params["embeddings"] = (jax.random.normal(next(ks), (vocab, d_llm), f32) * 0.02).astype(jnp.bfloat16)
    return params


# ----------------------------------- main ------------------------------------

if __name__ == "__main__":
    cfg = dict(
        pred_len=4, seq_len=16, n_vars=3,
        patch_len=4, stride=2, d_model=32,
        n_heads=4, d_ff=32,           # d_keys == d_ff -> E=32, H*E=128 (lane-dense heads)
        token_dim=64,                 # LLM embedding dim (d_llm)
        vocab=128, num_proto=16, prompt_len=8,
    )
    B = 2

    key = jax.random.PRNGKey(0)
    k_param, k_x, k_tok = jax.random.split(key, 3)
    params = init_params(k_param, cfg)

    x_enc = jax.random.normal(k_x, (B, cfg["seq_len"], cfg["n_vars"]), jnp.float32)
    prompt_tokens = jax.random.randint(k_tok, (B, cfg["prompt_len"]), 0, cfg["vocab"],
                                       dtype=jnp.int32)

    fwd = jax.jit(functools.partial(forecast, cfg=cfg))
    out = fwd(params, x_enc, prompt_tokens)
    out = jax.block_until_ready(out)
    assert out.shape == (B, cfg["pred_len"]), out.shape
    assert bool(jnp.all(jnp.isfinite(out)))
    print("KERNEL_OK")
</pallas_src>

<mosaic_0001>
module attributes {stable_mosaic.version = 11 : i64} {
  func.func @_proto_kv_kernel(%arg0: i32, %arg1: i32, %arg2: memref<8x128xbf16, #tpu.memory_space<vmem>>, %arg3: memref<128x64xbf16, #tpu.memory_space<vmem>>, %arg4: memref<8x1xf32, #tpu.memory_space<vmem>>, %arg5: memref<64x256xf32, #tpu.memory_space<vmem>>, %arg6: memref<1x256xf32, #tpu.memory_space<vmem>>, %arg7: memref<8x256xf32, #tpu.memory_space<vmem>>, %arg8: memref<8x64xf32, #tpu.memory_space<vmem>>) attributes {dimension_semantics = [#tpu.dimension_semantics<parallel>, #tpu.dimension_semantics<arbitrary>], iteration_bounds = array<i64: 2, 1>, scalar_prefetch = 0 : i64, scratch_operands = 1 : i64, tpu.core_type = #tpu.core_type<tc>, window_params = [{transform_indices = @transform_0, window_bounds = array<i64: 8, 128>}, {transform_indices = @transform_1, window_bounds = array<i64: 128, 64>}, {transform_indices = @transform_2, window_bounds = array<i64: 8, 1>}, {pipeline_mode = #tpu.pipeline_mode<synchronous>, transform_indices = @transform_3, window_bounds = array<i64: 64, 256>}, {pipeline_mode = #tpu.pipeline_mode<synchronous>, transform_indices = @transform_4, window_bounds = array<i64: 1, 256>}, {transform_indices = @transform_5, window_bounds = array<i64: 8, 256>}]} {
    %c0_i32 = arith.constant 0 : i32
    %0 = arith.cmpi eq, %arg1, %c0_i32 : i32
    %1 = arith.extui %0 : i1 to i32
    %c0_i32_0 = arith.constant 0 : i32
    %2 = arith.cmpi ne, %1, %c0_i32_0 : i32
    scf.if %2 {
      %cst_10 = arith.constant 0.000000e+00 : f32
      %12 = vector.broadcast %cst_10 : f32 to vector<8x64xf32>
      %c0_11 = arith.constant 0 : index
      %c0_12 = arith.constant 0 : index
      %13 = vector.load %arg8[%c0_11, %c0_12] : memref<8x64xf32, #tpu.memory_space<vmem>>, vector<8x64xf32>
      tpu.vector_store %arg8[%c0_11, %c0_12], %12 {strides = array<i32>} : memref<8x64xf32, #tpu.memory_space<vmem>>, vector<8x64xf32>,
    } else {
    }
    %c0 = arith.constant 0 : index
    %c0_1 = arith.constant 0 : index
    %3 = vector.load %arg8[%c0, %c0_1] : memref<8x64xf32, #tpu.memory_space<vmem>>, vector<8x64xf32>
    %c0_2 = arith.constant 0 : index
    %c0_3 = arith.constant 0 : index
    %4 = vector.load %arg2[%c0_2, %c0_3] : memref<8x128xbf16, #tpu.memory_space<vmem>>, vector<8x128xbf16>
    %c0_4 = arith.constant 0 : index
    %c0_5 = arith.constant 0 : index
    %5 = vector.load %arg3[%c0_4, %c0_5] : memref<128x64xbf16, #tpu.memory_space<vmem>>, vector<128x64xbf16>
    %cst = arith.constant dense<0.000000e+00> : vector<8x64xf32>
    %6 = tpu.matmul %4, %5, %cst {dimension_numbers = #tpu.dot_dimension_numbers<[1], [0], [0], [1], [0, 0, 1, 1], [], []>} : vector<8x128xbf16>, vector<128x64xbf16>, vector<8x64xf32> -> vector<8x64xf32>
    %7 = arith.addf %3, %6 : vector<8x64xf32>
    %c0_6 = arith.constant 0 : index
    %c0_7 = arith.constant 0 : index
    %8 = vector.load %arg8[%c0_6, %c0_7] : memref<8x64xf32, #tpu.memory_space<vmem>>, vector<8x64xf32>
    tpu.vector_store %arg8[%c0_6, %c0_7], %7 {strides = array<i32>} : memref<8x64xf32, #tpu.memory_space<vmem>>, vector<8x64xf32>,
    %c0_i32_8 = arith.constant 0 : i32
    %9 = arith.cmpi eq, %arg1, %c0_i32_8 : i32
    %10 = arith.extui %9 : i1 to i32
    %c0_i32_9 = arith.constant 0 : i32
    %11 = arith.cmpi ne, %10, %c0_i32_9 : i32
    scf.if %11 {
      %c0_10 = arith.constant 0 : index
      %c0_11 = arith.constant 0 : index
      %12 = vector.load %arg8[%c0_10, %c0_11] : memref<8x64xf32, #tpu.memory_space<vmem>>, vector<8x64xf32>
      %c0_12 = arith.constant 0 : index
      %c0_13 = arith.constant 0 : index
      %13 = vector.load %arg4[%c0_12, %c0_13] : memref<8x1xf32, #tpu.memory_space<vmem>>, vector<8x1xf32>
      %14 = vector.broadcast %13 : vector<8x1xf32> to vector<8x64xf32>
      %15 = arith.addf %12, %14 : vector<8x64xf32>
      %16 = arith.truncf %15 : vector<8x64xf32> to vector<8x64xbf16>
      %c0_14 = arith.constant 0 : index
      %c0_15 = arith.constant 0 : index
      %17 = vector.load %arg5[%c0_14, %c0_15] : memref<64x256xf32, #tpu.memory_space<vmem>>, vector<64x256xf32>
      %18 = arith.truncf %17 : vector<64x256xf32> to vector<64x256xbf16>
      %cst_16 = arith.constant dense<0.000000e+00> : vector<8x256xf32>
      %19 = tpu.matmul %16, %18, %cst_16 {dimension_numbers = #tpu.dot_dimension_numbers<[1], [0], [0], [1], [0, 0, 1, 1], [], []>} : vector<8x64xbf16>, vector<64x256xbf16>, vector<8x256xf32> -> vector<8x256xf32>
      %c0_17 = arith.constant 0 : index
      %c0_18 = arith.constant 0 : index
      %20 = vector.load %arg6[%c0_17, %c0_18] : memref<1x256xf32, #tpu.memory_space<vmem>>, vector<1x256xf32>
      %21 = vector.broadcast %20 : vector<1x256xf32> to vector<8x256xf32>
      %22 = arith.addf %19, %21 : vector<8x256xf32>
      %c0_19 = arith.constant 0 : index
      %c0_20 = arith.constant 0 : index
      %23 = vector.load %arg7[%c0_19, %c0_20] : memref<8x256xf32, #tpu.memory_space<vmem>>, vector<8x256xf32>
      tpu.vector_store %arg7[%c0_19, %c0_20], %22 {strides = array<i32>} : memref<8x256xf32, #tpu.memory_space<vmem>>, vector<8x256xf32>,
    } else {
    }
    return
  }
  func.func @transform_0(%arg0: i32, %arg1: i32) -> (i32, i32) {
    %c0_i32 = arith.constant 0 : i32
    return %arg0, %arg1 : i32, i32
  }
  func.func @transform_1(%arg0: i32, %arg1: i32) -> (i32, i32) {
    %c0_i32 = arith.constant 0 : i32
    %c0_i32_0 = arith.constant 0 : i32
    return %arg1, %c0_i32 : i32, i32
  }
  func.func @transform_2(%arg0: i32, %arg1: i32) -> (i32, i32) {
    %c0_i32 = arith.constant 0 : i32
    %c0_i32_0 = arith.constant 0 : i32
    return %arg0, %c0_i32 : i32, i32
  }
  func.func @transform_3(%arg0: i32, %arg1: i32) -> (i32, i32) {
    %c0_i32 = arith.constant 0 : i32
    %c0_i32_0 = arith.constant 0 : i32
    %c0_i32_1 = arith.constant 0 : i32
    return %c0_i32, %c0_i32_0 : i32, i32
  }
  func.func @transform_4(%arg0: i32, %arg1: i32) -> (i32, i32) {
    %c0_i32 = arith.constant 0 : i32
    %c0_i32_0 = arith.constant 0 : i32
    %c0_i32_1 = arith.constant 0 : i32
    return %c0_i32, %c0_i32_0 : i32, i32
  }
  func.func @transform_5(%arg0: i32, %arg1: i32) -> (i32, i32) {
    %c0_i32 = arith.constant 0 : i32
    %c0_i32_0 = arith.constant 0 : i32
    return %arg0, %c0_i32 : i32, i32
  }
}

module attributes {stable_mosaic.version = 11 : i64} {
  func.func @_conv_reprog_kernel(%arg0: i32, %arg1: memref<1x24x12xf32, #tpu.memory_space<vmem>>, %arg2: memref<12x32xf32, #tpu.memory_space<vmem>>, %arg3: memref<1x32xf32, #tpu.memory_space<vmem>>, %arg4: memref<32x128xf32, #tpu.memory_space<vmem>>, %arg5: memref<1x128xf32, #tpu.memory_space<vmem>>, %arg6: memref<128x64xbf16, #tpu.memory_space<vmem>>, %arg7: memref<64x128xbf16, #tpu.memory_space<vmem>>, %arg8: memref<64x64xf32, #tpu.memory_space<vmem>>, %arg9: memref<128x64xf32, #tpu.memory_space<vmem>>, %arg10: memref<1x64xf32, #tpu.memory_space<vmem>>, %arg11: memref<1x24x64xf32, #tpu.memory_space<vmem>>) attributes {dimension_semantics = [#tpu.dimension_semantics<parallel>], iteration_bounds = array<i64: 2>, scalar_prefetch = 0 : i64, scratch_operands = 0 : i64, tpu.core_type = #tpu.core_type<tc>, window_params = [{transform_indices = @transform_0, window_bounds = array<i64: 1, 24, 12>}, {pipeline_mode = #tpu.pipeline_mode<synchronous>, transform_indices = @transform_1, window_bounds = array<i64: 12, 32>}, {pipeline_mode = #tpu.pipeline_mode<synchronous>, transform_indices = @transform_2, window_bounds = array<i64: 1, 32>}, {pipeline_mode = #tpu.pipeline_mode<synchronous>, transform_indices = @transform_3, window_bounds = array<i64: 32, 128>}, {pipeline_mode = #tpu.pipeline_mode<synchronous>, transform_indices = @transform_4, window_bounds = array<i64: 1, 128>}, {pipeline_mode = #tpu.pipeline_mode<synchronous>, transform_indices = @transform_5, window_bounds = array<i64: 128, 64>}, {pipeline_mode = #tpu.pipeline_mode<synchronous>, transform_indices = @transform_6, window_bounds = array<i64: 64, 128>}, {pipeline_mode = #tpu.pipeline_mode<synchronous>, transform_indices = @transform_7, window_bounds = array<i64: 64, 64>}, {pipeline_mode = #tpu.pipeline_mode<synchronous>, transform_indices = @transform_8, window_bounds = array<i64: 128, 64>}, {pipeline_mode = #tpu.pipeline_mode<synchronous>, transform_indices = @transform_9, window_bounds = array<i64: 1, 64>}, {transform_indices = @transform_10, window_bounds = array<i64: 1, 24, 64>}]} {
    %c0 = arith.constant 0 : index
    %c0_0 = arith.constant 0 : index
    %c0_1 = arith.constant 0 : index
    %0 = vector.load %arg1[%c0, %c0_0, %c0_1] : memref<1x24x12xf32, #tpu.memory_space<vmem>>, vector<1x24x12xf32>
    %1 = vector.shape_cast %0 : vector<1x24x12xf32> to vector<24x12xf32>
    %2 = arith.truncf %1 : vector<24x12xf32> to vector<24x12xbf16>
    %c0_2 = arith.constant 0 : index
    %c0_3 = arith.constant 0 : index
    %3 = vector.load %arg2[%c0_2, %c0_3] : memref<12x32xf32, #tpu.memory_space<vmem>>, vector<12x32xf32>
    %4 = arith.truncf %3 : vector<12x32xf32> to vector<12x32xbf16>
    %cst = arith.constant dense<0.000000e+00> : vector<24x32xf32>
    %5 = tpu.matmul %2, %4, %cst {dimension_numbers = #tpu.dot_dimension_numbers<[1], [0], [0], [1], [0, 0, 1, 1], [], []>} : vector<24x12xbf16>, vector<12x32xbf16>, vector<24x32xf32> -> vector<24x32xf32>
    %c0_4 = arith.constant 0 : index
    %c0_5 = arith.constant 0 : index
    %6 = vector.load %arg3[%c0_4, %c0_5] : memref<1x32xf32, #tpu.memory_space<vmem>>, vector<1x32xf32>
    %7 = vector.broadcast %6 : vector<1x32xf32> to vector<24x32xf32>
    %8 = arith.addf %5, %7 : vector<24x32xf32>
    %9 = arith.truncf %8 : vector<24x32xf32> to vector<24x32xbf16>
    %c0_6 = arith.constant 0 : index
    %c0_7 = arith.constant 0 : index
    %10 = vector.load %arg4[%c0_6, %c0_7] : memref<32x128xf32, #tpu.memory_space<vmem>>, vector<32x128xf32>
    %11 = arith.truncf %10 : vector<32x128xf32> to vector<32x128xbf16>
    %cst_8 = arith.constant dense<0.000000e+00> : vector<24x128xf32>
    %12 = tpu.matmul %9, %11, %cst_8 {dimension_numbers = #tpu.dot_dimension_numbers<[1], [0], [0], [1], [0, 0, 1, 1], [], []>} : vector<24x32xbf16>, vector<32x128xbf16>, vector<24x128xf32> -> vector<24x128xf32>
    %c0_9 = arith.constant 0 : index
    %c0_10 = arith.constant 0 : index
    %13 = vector.load %arg5[%c0_9, %c0_10] : memref<1x128xf32, #tpu.memory_space<vmem>>, vector<1x128xf32>
    %14 = vector.broadcast %13 : vector<1x128xf32> to vector<24x128xf32>
    %15 = arith.addf %12, %14 : vector<24x128xf32>
    %cst_11 = arith.constant 0.176776692 : f32
    %16 = vector.broadcast %cst_11 : f32 to vector<24x128xf32>
    %17 = arith.mulf %15, %16 : vector<24x128xf32>
    %18 = arith.truncf %17 : vector<24x128xf32> to vector<24x128xbf16>
    %c0_12 = arith.constant 0 : index
    %c0_13 = arith.constant 0 : index
    %19 = vector.load %arg6[%c0_12, %c0_13] : memref<128x64xbf16, #tpu.memory_space<vmem>>, vector<128x64xbf16>
    %cst_14 = arith.constant dense<0.000000e+00> : vector<24x64xf32>
    %20 = tpu.matmul %18, %19, %cst_14 {dimension_numbers = #tpu.dot_dimension_numbers<[1], [0], [0], [1], [0, 0, 1, 1], [], []>} : vector<24x128xbf16>, vector<128x64xbf16>, vector<24x64xf32> -> vector<24x64xf32>
    %cst_15 = arith.constant dense<0xFF800000> : vector<24xf32>
    %21 = vector.multi_reduction <maximumf>, %20, %cst_15 [1] : vector<24x64xf32> to vector<24xf32>
    %22 = vector.shape_cast %21 : vector<24xf32> to vector<24x1xf32>
    %23 = vector.broadcast %22 : vector<24x1xf32> to vector<24x64xf32>
    %24 = arith.subf %20, %23 : vector<24x64xf32>
    %25 = math.exp %24 : vector<24x64xf32>
    %c0_16 = arith.constant 0 : index
    %c0_17 = arith.constant 0 : index
    %26 = vector.load %arg8[%c0_16, %c0_17] : memref<64x64xf32, #tpu.memory_space<vmem>>, vector<64x64xf32>
    %cst_18 = arith.constant dense<0.000000e+00> : vector<24x64xf32>
    %27 = tpu.matmul %25, %26, %cst_18 {dimension_numbers = #tpu.dot_dimension_numbers<[1], [0], [0], [1], [0, 0, 1, 1], [], []>} : vector<24x64xf32>, vector<64x64xf32>, vector<24x64xf32> -> vector<24x64xf32>
    %28 = tpu.reciprocal %27 {approx = true} : vector<24x64xf32> -> vector<24x64xf32>
    %29 = arith.mulf %25, %28 : vector<24x64xf32>
    %30 = arith.truncf %29 : vector<24x64xf32> to vector<24x64xbf16>
    %c0_19 = arith.constant 0 : index
    %c0_20 = arith.constant 0 : index
    %31 = vector.load %arg7[%c0_19, %c0_20] : memref<64x128xbf16, #tpu.memory_space<vmem>>, vector<64x128xbf16>
    %cst_21 = arith.constant dense<0.000000e+00> : vector<24x128xf32>
    %32 = tpu.matmul %30, %31, %cst_21 {dimension_numbers = #tpu.dot_dimension_numbers<[1], [0], [0], [1], [0, 0, 1, 1], [], []>} : vector<24x64xbf16>, vector<64x128xbf16>, vector<24x128xf32> -> vector<24x128xf32>
    %33 = arith.truncf %32 : vector<24x128xf32> to vector<24x128xbf16>
    %c0_22 = arith.constant 0 : index
    %c0_23 = arith.constant 0 : index
    %34 = vector.load %arg9[%c0_22, %c0_23] : memref<128x64xf32, #tpu.memory_space<vmem>>, vector<128x64xf32>
    %35 = arith.truncf %34 : vector<128x64xf32> to vector<128x64xbf16>
    %cst_24 = arith.constant dense<0.000000e+00> : vector<24x64xf32>
    %36 = tpu.matmul %33, %35, %cst_24 {dimension_numbers = #tpu.dot_dimension_numbers<[1], [0], [0], [1], [0, 0, 1, 1], [], []>} : vector<24x128xbf16>, vector<128x64xbf16>, vector<24x64xf32> -> vector<24x64xf32>
    %c0_25 = arith.constant 0 : index
    %c0_26 = arith.constant 0 : index
    %37 = vector.load %arg10[%c0_25, %c0_26] : memref<1x64xf32, #tpu.memory_space<vmem>>, vector<1x64xf32>
    %38 = vector.broadcast %37 : vector<1x64xf32> to vector<24x64xf32>
    %39 = arith.addf %36, %38 : vector<24x64xf32>
    %c0_27 = arith.constant 0 : index
    %c0_28 = arith.constant 0 : index
    %c0_29 = arith.constant 0 : index
    %40 = vector.load %arg11[%c0_27, %c0_28, %c0_29] : memref<1x24x64xf32, #tpu.memory_space<vmem>>, vector<1x24x64xf32>
    %41 = vector.shape_cast %40 : vector<1x24x64xf32> to vector<24x64xf32>
    %42 = vector.shape_cast %39 : vector<24x64xf32> to vector<1x24x64xf32>
    tpu.vector_store %arg11[%c0_27, %c0_28, %c0_29], %42 {strides = array<i32>} : memref<1x24x64xf32, #tpu.memory_space<vmem>>, vector<1x24x64xf32>,
    return
  }
  func.func @transform_0(%arg0: i32) -> (i32, i32, i32) {
    %c0_i32 = arith.constant 0 : i32
    %c0_i32_0 = arith.constant 0 : i32
    %c0_i32_1 = arith.constant 0 : i32
    return %arg0, %c0_i32, %c0_i32_0 : i32, i32, i32
  }
  func.func @transform_1(%arg0: i32) -> (i32, i32) {
    %c0_i32 = arith.constant 0 : i32
    %c0_i32_0 = arith.constant 0 : i32
    %c0_i32_1 = arith.constant 0 : i32
    return %c0_i32, %c0_i32_0 : i32, i32
  }
  func.func @transform_2(%arg0: i32) -> (i32, i32) {
    %c0_i32 = arith.constant 0 : i32
    %c0_i32_0 = arith.constant 0 : i32
    %c0_i32_1 = arith.constant 0 : i32
    return %c0_i32, %c0_i32_0 : i32, i32
  }
  func.func @transform_3(%arg0: i32) -> (i32, i32) {
    %c0_i32 = arith.constant 0 : i32
    %c0_i32_0 = arith.constant 0 : i32
    %c0_i32_1 = arith.constant 0 : i32
    return %c0_i32, %c0_i32_0 : i32, i32
  }
  func.func @transform_4(%arg0: i32) -> (i32, i32) {
    %c0_i32 = arith.constant 0 : i32
    %c0_i32_0 = arith.constant 0 : i32
    %c0_i32_1 = arith.constant 0 : i32
    return %c0_i32, %c0_i32_0 : i32, i32
  }
  func.func @transform_5(%arg0: i32) -> (i32, i32) {
    %c0_i32 = arith.constant 0 : i32
    %c0_i32_0 = arith.constant 0 : i32
    %c0_i32_1 = arith.constant 0 : i32
    return %c0_i32, %c0_i32_0 : i32, i32
  }
  func.func @transform_6(%arg0: i32) -> (i32, i32) {
    %c0_i32 = arith.constant 0 : i32
    %c0_i32_0 = arith.constant 0 : i32
    %c0_i32_1 = arith.constant 0 : i32
    return %c0_i32, %c0_i32_0 : i32, i32
  }
  func.func @transform_7(%arg0: i32) -> (i32, i32) {
    %c0_i32 = arith.constant 0 : i32
    %c0_i32_0 = arith.constant 0 : i32
    %c0_i32_1 = arith.constant 0 : i32
    return %c0_i32, %c0_i32_0 : i32, i32
  }
  func.func @transform_8(%arg0: i32) -> (i32, i32) {
    %c0_i32 = arith.constant 0 : i32
    %c0_i32_0 = arith.constant 0 : i32
    %c0_i32_1 = arith.constant 0 : i32
    return %c0_i32, %c0_i32_0 : i32, i32
  }
  func.func @transform_9(%arg0: i32) -> (i32, i32) {
    %c0_i32 = arith.constant 0 : i32
    %c0_i32_0 = arith.constant 0 : i32
    %c0_i32_1 = arith.constant 0 : i32
    return %c0_i32, %c0_i32_0 : i32, i32
  }
  func.func @transform_10(%arg0: i32) -> (i32, i32, i32) {
    %c0_i32 = arith.constant 0 : i32
    %c0_i32_0 = arith.constant 0 : i32
    %c0_i32_1 = arith.constant 0 : i32
    return %arg0, %c0_i32, %c0_i32_0 : i32, i32, i32
  }
}

</mosaic_0001>

<bundles_post_ra>
// kernel: forecast.2
= control target key start
LH: loop header
LB: loop body
LE: loop exit
PB: predicated region body
PF: predicated region fallthrough
CT: control target
= control target key end

     0   :  { %s678_s18 = smov 0   ;;  %s680_s19 = smov 0   ;;  %s798_s0 = inlined_call_operand.vmem [shape: bf16[16,128], index: 0, kind: input, shape index: {}]   ;;  %s799_s1 = inlined_call_operand.vmem [shape: bf16[128,64], index: 1, kind: input, shape index: {}]   ;;  %s800_s2 = inlined_call_operand.vmem [shape: f32[16,1], index: 2, kind: input, shape index: {}]   ;;  %s801_s3 = inlined_call_operand.vmem [shape: f32[64,256], index: 3, kind: input, shape index: {}]   ;;  %s802_s4 = inlined_call_operand.vmem [shape: f32[1,256], index: 4, kind: input, shape index: {}]   ;;  %s803_s5 = inlined_call_operand.vmem [shape: f32[16,256], index: 5, kind: output, shape index: {}]  }
   0x1   :  { %s682_s20 = smov 0  }
   0x2 LB: > { %s27_s21 = sadd.s32 1, %s640_s19  ;;  %p545_p0 = scmp.ge.s32.totalorder %s644_s20, 1  ;;  %s644_s20 = sphi %s682_s20, %s15_s20   ;;  %s640_s19 = sphi %s680_s19, %s805_s19   ;;  %s636_s18 = sphi %s678_s18, %s804_s18  }
   0x3   : > { %p29_p1 = scmp.ge.s32.totalorder %s27_s21, 2  ;;  %p223_p2 = scmp.lt.s32.totalorder %s644_s20, 3 }
   0x5   : > { %s807_s21 = smov (%p29_p1, %s27_s21), 0  ;;  %p224_p3 = pnand %p545_p0, %p223_p2 }
   0x6   : > { %p262_p4 = scmp.lt.s32.totalorder (!%p224_p3), %s636_s18, 1 }
   0x7   : > { %227 = sbr.rel (%p224_p3) target bundleno = 324 (0x144), region = 40 }
   0xc   : > { %v594_v0 = vld [vmem:[%s799_s1 + $0x38] sm:$0xff]  ;;  %vm289_vm0 = vcmask 523264   ;;  %v593_v1 = vld [vmem:[%s799_s1 + $0x30] sm:$0xff]  ;;  %s809_s18 = smov (!%p262_p4, %s636_s18), 1  ;;  %v646_v2 = vmov 0   ;;  %v647_v3 = vmov 0.0  }
   0xd   : > { %357 = vmatpush.bf16.msra.mxu0 %v594_v0  ;;  %621 = vset.pattern.permute.xlu0 %v646_v2  ;;  %290 = vst.msk [vmem:[#allocation2] sm:$0xff] %vm289_vm0, %v647_v3  ;;  %s547_s26 = sshll.u32 %s809_s18, 3  ;;  %v592_v4 = vld [vmem:[%s799_s1 + $0x28] sm:$0xff]  ;;  %v591_v6 = vld [vmem:[%s799_s1 + $0x20] sm:$0xff]  ;;  %v590_v7 = vld [vmem:[%s799_s1 + $0x18] sm:$0xff]  ;;  %s546_s15 = sshll.u32 %s809_s18, 2 }
   0xe   : > { %s278_s29 = scalar_lea.vmem %s800_s2, %s547_s26  ;;  %v589_v8 = vld [vmem:[%s799_s1 + $0x10] sm:$0xff]  ;;  %v588_v9 = vld [vmem:[%s799_s1 + $0x8] sm:$0xff]  ;;  %v587_v10 = vld [vmem:[%s799_s1] sm:$0xff]  ;;  %s268_s24 = scalar_lea.vmem %s798_s0, %s546_s15 }
   0xf   : > { %v377_v5 = vld [vmem:[%s278_s29] sm:$0xff]  ;;  %v399_v13 = vld [vmem:[%s801_s3 + $0x70] sm:$0xff]  ;;  %v398_v14 = vld [vmem:[%s801_s3 + $0x68] sm:$0xff]  ;;  %s586_s13 = sshll.u32 %s809_s18, 4 }
  0x10   : > { %380 = vperm.xlu0 %621, %v377_v5   ;;  %v292_v11 = vld [vmem:[%s268_s24] sm:$0xf]  ;;  %v400_v16 = vld [vmem:[%s801_s3 + $0x78] sm:$0xff]  ;;  %v395_v19 = vld [vmem:[%s801_s3 + $0x50] sm:$0xff]  ;;  %s283_s16 = scalar_lea.vmem %s803_s5, %s586_s13 }
  0x11   : > { %358 = vmatpush.bf16.msra.mxu0 %v593_v1  ;;  %v397_v12 = vld [vmem:[%s801_s3 + $0x60] sm:$0xff]  ;;  %v408_v17 = vpack.c.bf16 %v400_v16, %v398_v14  ;;  %v394_v20 = vld [vmem:[%s801_s3 + $0x48] sm:$0xff]  ;;  %v396_v22 = vld [vmem:[%s801_s3 + $0x58] sm:$0xff] }
  0x12   : > { %v407_v15 = vpack.c.bf16 %v399_v13, %v397_v12  ;;  %v393_v18 = vld [vmem:[%s801_s3 + $0x40] sm:$0xff]  ;;  %v406_v23 = vpack.c.bf16 %v396_v22, %v394_v20  ;;  %v391_v25 = vld [vmem:[%s801_s3 + $0x30] sm:$0xff]  ;;  %v390_v26 = vld [vmem:[%s801_s3 + $0x28] sm:$0xff] }
  0x13   : > { %435 = vmatpush.bf16.msra.mxu2 %v408_v17  ;;  %v405_v21 = vpack.c.bf16 %v395_v19, %v393_v18  ;;  %v389_v24 = vld [vmem:[%s801_s3 + $0x20] sm:$0xff]  ;;  %v392_v28 = vld [vmem:[%s801_s3 + $0x38] sm:$0xff]  ;;  %v387_v31 = vld [vmem:[%s801_s3 + $0x10] sm:$0xff] }
  0x14   : > { %422 = vmatpush.bf16.msra.mxu1 %v407_v15  ;;  %v403_v27 = vpack.c.bf16 %v391_v25, %v389_v24  ;;  %v404_v29 = vpack.c.bf16 %v392_v28, %v390_v26  ;;  %v385_v30 = vld [vmem:[%s801_s3] sm:$0xff]  ;;  %v386_v32 = vld [vmem:[%s801_s3 + $0x8] sm:$0xff]  ;;  %v388_v34 = vld [vmem:[%s801_s3 + $0x18] sm:$0xff] }
  0x15   : > { %359 = vmatpush.bf16.msra.mxu0 %v592_v4  ;;  %v401_v33 = vpack.c.bf16 %v387_v31, %v385_v30  ;;  %v402_v35 = vpack.c.bf16 %v388_v34, %v386_v32  ;;  %v291_v36 = vld [vmem:[#allocation2] sm:$0xff] }
  0x16   : > { %v409_v44 = vld [vmem:[%s802_s4] sm:$0x3] }
  0x17   : > { %436 = vmatpush.bf16.msra.mxu2 %v406_v23  ;;  %v411_v45 = vperm.slane %v409_v44, 0  ;;  %v412_v48 = vperm.slane %v409_v44, 1 }
  0x18   : > { %423 = vmatpush.bf16.msra.mxu1 %v405_v21 }
  0x19   : > { %360 = vmatpush.bf16.msra.mxu0 %v591_v6 }
  0x1b   : > { %437 = vmatpush.bf16.msra.mxu2 %v404_v29 }
  0x1c   : > { %424 = vmatpush.bf16.msra.mxu1 %v403_v27 }
  0x1d   : > { %361 = vmatpush.bf16.msra.mxu0 %v590_v7 }
  0x1f   : > { %438 = vmatpush.bf16.msra.mxu2 %v402_v35 }
  0x20   : > { %425 = vmatpush.bf16.msra.mxu1 %v401_v33 }
  0x21   : > { %362 = vmatpush.bf16.msra.mxu0 %v589_v8 }
  0x25   : > { %363 = vmatpush.bf16.msra.mxu0 %v588_v9 }
  0x29   : > { %364 = vmatpush.bf16.msra.mxu0 %v587_v10 }
  0x2c   : > { %365 = vmatmul.bf16.vlgmr.msra.gmra.mxu0 %v292_v11 }
  0x82   : > { %v381_v40 = vpop.permute.xlu0 %380 }
  0xa9   : > { %v366_v37 = vpop.f32.mrf.mxu0 }
  0xaa   : > { %v370_v38 = vadd.f32 %v366_v37, %v291_v36 }
  0xac   : > { %372 = vst.msk [vmem:[#allocation2] sm:$0xff] %vm289_vm0, %v370_v38 }
  0xb1   : > { %v368_v39 = vpop.f32.mrf.mxu0 }
  0xb3   : > { %v376_v41 = vld [vmem:[#allocation2] sm:$0xff] }
  0xb4   : > { %v383_v42 = vadd.f32 %v381_v40, %v376_v41 }
  0xb6   : > { %v384_v43 = vpack.c.bf16 %v383_v42, %v383_v42 }
  0xb8   : > { %582 = vmatmul.msk.bf16.vlgmr.msra.gmra.mxu1 %vm289_vm0, %v384_v43  ;;  %583 = vmatmul.msk.bf16.vlgmr.msra.gmra.mxu2 %vm289_vm0, %v384_v43 }
 0x135   : > { %v427_v46 = vpop.f32.mrf.mxu1 }
 0x136   : > { %v428_v47 = vadd.f32 %v427_v46, %v411_v45 }
 0x138   : > { %444 = vst [vmem:[%s283_s16] sm:$0xff] %v428_v47 }
 0x13b   : > { %v440_v49 = vpop.f32.mrf.mxu2 }
 0x13c   : > { %v441_v50 = vadd.f32 %v440_v49, %v412_v48 }
 0x13d   : > { %v429_v51 = vpop.f32.mrf.mxu1 }
 0x13e   : > { %445 = vst [vmem:[%s283_s16 + $0x8] sm:$0xff] %v441_v50 }
 0x143   : > { %v442_v52 = vpop.f32.mrf.mxu2 }
 0x144 PF: > { %s15_s20 = sadd.s32 1, %s644_s20   ;;  %s804_s18 = smov %s640_s19 }
 0x145   : > { %p12_p5 = scmp.ge.s32.totalorder %s15_s20, 4   ;;  %s805_s19 = smov %s807_s21 }
 0x147   :  { %14 = sbr.rel (!%p12_p5) target bundleno = 2 (0x2), region = 84 }

// kernel: forecast.3
= control target key start
LH: loop header
LB: loop body
LE: loop exit
PB: predicated region body
PF: predicated region fallthrough
CT: control target
= control target key end

     0   :  { %s923_s13 = smov 0   ;;  %s1093_s0 = inlined_call_operand.vmem [shape: f32[2,24,12], index: 0, kind: input, shape index: {}]   ;;  %s1094_s1 = inlined_call_operand.vmem [shape: f32[12,32], index: 1, kind: input, shape index: {}]   ;;  %s1095_s2 = inlined_call_operand.vmem [shape: f32[1,32], index: 2, kind: input, shape index: {}]   ;;  %s1096_s3 = inlined_call_operand.vmem [shape: f32[32,128], index: 3, kind: input, shape index: {}]   ;;  %s1097_s4 = inlined_call_operand.vmem [shape: f32[1,128], index: 4, kind: input, shape index: {}]   ;;  %s1098_s5 = inlined_call_operand.vmem [shape: bf16[128,64], index: 5, kind: input, shape index: {}]   ;;  %s1099_s6 = inlined_call_operand.vmem [shape: bf16[64,128], index: 6, kind: input, shape index: {}]   ;;  %s1100_s7 = inlined_call_operand.vmem [shape: f32[64,64], index: 7, kind: input, shape index: {}]   ;;  %s1101_s8 = inlined_call_operand.vmem [shape: f32[128,64], index: 8, kind: input, shape index: {}]   ;;  %s1102_s9 = inlined_call_operand.vmem [shape: f32[1,64], index: 9, kind: input, shape index: {}]   ;;  %s1103_s10 = inlined_call_operand.vmem [shape: f32[2,24,64], index: 10, kind: output, shape index: {}]  }
   0x1 LB: > { %s758_s14 = sadd.s32 4294967295, %s866_s13   ;;  %p762_p0 = scmp.ge.s32.totalorder %s866_s13, 1  ;;  %s866_s13 = sphi %s923_s13, %s20_s13  }
   0x2   : > { %p312_p1 = scmp.lt.s32.totalorder %s866_s13, 3 }
   0x4   : > { %p313_p2 = pnand %p762_p0, %p312_p1 }
   0x5   : > { %p350_p3 = scmp.lt.s32.totalorder (!%p313_p2), %s758_s14, 1 }
   0x6   : > { %316 = sbr.rel (%p313_p2) target bundleno = 999 (0x3e7), region = 60 }
   0xb   : > { %v366_v0 = vld [vmem:[%s1094_s1] sm:$0xff]  ;;  %v367_v1 = vld [vmem:[%s1094_s1 + $0x8] sm:$0xf]  ;;  %vm380_vm0 = vcmask 1045504   ;;  %s1105_s14 = smov (!%p350_p3, %s758_s14), 1  ;;  %vm373_vm1 = vcmask 97280  }
   0xc   : > { %v368_v2 = vpack.c.bf16 %v367_v1, %v366_v0  ;;  %s836_s19 = smul.u32 24, %s1105_s14  ;;  %v406_v9 = vld [vmem:[%s1096_s3 + $0x10] sm:$0xff]  ;;  %v407_v10 = vld [vmem:[%s1096_s3 + $0x18] sm:$0xff]  ;;  %v404_v12 = vld [vmem:[%s1096_s3] sm:$0xff]  ;;  %vm414_vm2 = vcmask 261120   ;;  %vm526_vm3 = vcmask 523264  }
   0xd   : > { %v409_v11 = vpack.c.bf16 %v407_v10, %v406_v9  ;;  %v405_v13 = vld [vmem:[%s1096_s3 + $0x8] sm:$0xff]  ;;  %v831_v15 = vld [vmem:[%s1098_s5 + $0x38] sm:$0xff]  ;;  %v830_v16 = vld [vmem:[%s1098_s5 + $0x30] sm:$0xff] }
   0xe   : > { %v382_v3 = vsel %vm380_vm0, %v368_v2, 0  ;;  %s354_s22 = scalar_lea.vmem %s1093_s0, %s836_s19  ;;  %v408_v14 = vpack.c.bf16 %v405_v13, %v404_v12  ;;  %508 = vmatpush.bf16.msra.mxu2 %v831_v15  ;;  %v829_v18 = vld [vmem:[%s1098_s5 + $0x28] sm:$0xff]  ;;  %v845_v19 = vld [vmem:[%s1095_s2] ss:$0 sm:$0xff]  ;;  %v827_v29 = vld [vmem:[%s1098_s5 + $0x18] sm:$0xff]  ;;  %s359_s26 = scalar_lea.vmem %s1103_s10, %s836_s19 }
   0xf   : > { %391 = vmatpush.bf16.msra.mxu0 %v382_v3  ;;  %v361_v4 = vld [vmem:[%s354_s22] sm:$0xff]  ;;  %v362_v5 = vld [vmem:[%s354_s22 + $0x8] sm:$0xff]  ;;  %v363_v7 = vld [vmem:[%s354_s22 + $0x10] sm:$0xff]  ;;  %427 = vmatpush.bf16.msra.mxu3 %v409_v11 }
  0x10   : > { %v364_v6 = vpack.c.bf16 %v362_v5, %v361_v4  ;;  %v365_v8 = vpack.c.bf16 %v363_v7, %v363_v7  ;;  %v828_v20 = vld [vmem:[%s1098_s5 + $0x20] sm:$0xff]  ;;  %v826_v30 = vld [vmem:[%s1098_s5 + $0x10] sm:$0xff]  ;;  %v825_v31 = vld [vmem:[%s1098_s5 + $0x8] sm:$0xff] }
  0x11   : > { %v824_v32 = vld [vmem:[%s1098_s5] sm:$0xff]  ;;  %v552_v46 = vld [vmem:[%s1100_s7 + $0x38] sm:$0xff]  ;;  %v551_v47 = vld [vmem:[%s1100_s7 + $0x30] sm:$0xff] }
  0x12   : > { %765 = vmatmul.msk.bf16.vlgmr.msra.gmra.mxu0 %vm373_vm1, %v364_v6  ;;  %509 = vmatpush.bf16.msra.mxu2 %v830_v16  ;;  %v846_v34 = vld [vmem:[%s1097_s4] ss:$0 sm:$0xff]  ;;  %v550_v48 = vld [vmem:[%s1100_s7 + $0x28] sm:$0xff]  ;;  %v548_v50 = vld [vmem:[%s1100_s7 + $0x18] sm:$0xff] }
  0x13   : > { %428 = vmatpush.bf16.msra.mxu3 %v408_v14  ;;  %v549_v49 = vld [vmem:[%s1100_s7 + $0x20] sm:$0xff]  ;;  %v547_v52 = vld [vmem:[%s1100_s7 + $0x10] sm:$0xff]  ;;  %v546_v59 = vld [vmem:[%s1100_s7 + $0x8] sm:$0xff] }
  0x14   : > { %v545_v60 = vld [vmem:[%s1100_s7] sm:$0xff]  ;;  %v835_v61 = vld [vmem:[%s1099_s6 + $0x18] sm:$0xff]  ;;  %v834_v62 = vld [vmem:[%s1099_s6 + $0x10] sm:$0xff] }
  0x15   : > { %638 = vmatpush.bf16.msrb.mxu0 %v835_v61  ;;  %v833_v11 = vld [vmem:[%s1099_s6 + $0x8] sm:$0xff]  ;;  %v832_v12 = vld [vmem:[%s1099_s6] sm:$0xff]  ;;  %v668_v14 = vld [vmem:[%s1101_s8 + $0x70] sm:$0xff] }
  0x16   : > { %510 = vmatpush.bf16.msra.mxu2 %v829_v18  ;;  %v669_v15 = vld [vmem:[%s1101_s8 + $0x78] sm:$0xff]  ;;  %v666_v16 = vld [vmem:[%s1101_s8 + $0x60] sm:$0xff]  ;;  %v667_v18 = vld [vmem:[%s1101_s8 + $0x68] sm:$0xff] }
  0x17   : > { %570 = vmatpush.msrb.mxu3 %v552_v46  ;;  %v655_v46 = vld [vmem:[%s1101_s8 + $0x8] sm:$0xff] }
  0x19   : > { %571 = vmatpush.msrb.mxu3 %v551_v47  ;;  %639 = vmatpush.bf16.msrb.mxu0 %v834_v62 }
  0x1a   : > { %511 = vmatpush.bf16.msra.mxu2 %v828_v20 }
  0x1b   : > { %572 = vmatpush.msrb.mxu3 %v550_v48 }
  0x1d   : > { %573 = vmatpush.msrb.mxu3 %v549_v49  ;;  %640 = vmatpush.bf16.msrb.mxu0 %v833_v11 }
  0x1e   : > { %512 = vmatpush.bf16.msra.mxu2 %v827_v29 }
  0x1f   : > { %574 = vmatpush.msrb.mxu3 %v548_v50 }
  0x21   : > { %575 = vmatpush.msrb.mxu3 %v547_v52  ;;  %641 = vmatpush.bf16.msrb.mxu0 %v832_v12 }
  0x22   : > { %766 = vmatmul.msk.bf16.gmra.mxu0 %vm373_vm1, %v365_v8  ;;  %513 = vmatpush.bf16.msra.mxu2 %v826_v30 }
  0x23   : > { %576 = vmatpush.msrb.mxu3 %v546_v59 }
  0x25   : > { %577 = vmatpush.msrb.mxu3 %v545_v60 }
  0x26   : > { %514 = vmatpush.bf16.msra.mxu2 %v825_v31  ;;  %v660_v31 = vld [vmem:[%s1101_s8 + $0x30] sm:$0xff] }
  0x2a   : > { %515 = vmatpush.bf16.msra.mxu2 %v824_v32  ;;  %v661_v32 = vld [vmem:[%s1101_s8 + $0x38] sm:$0xff] }
  0x8f   : > { %v393_v17 = vpop.f32.mrf.mxu0 }
  0x90   : > { %v394_v22 = vadd.f32 %v845_v19, %v393_v17  ;;  %v677_v17 = vpack.c.bf16 %v669_v15, %v668_v14 }
  0x92   : > { %682 = vmatpush.bf16.msra.mxu1 %v677_v17 }
  0x97   : > { %v395_v21 = vpop.f32.mrf.mxu0 }
  0x98   : > { %v396_v23 = vadd.f32 %v845_v19, %v395_v21  ;;  %v664_v21 = vld [vmem:[%s1101_s8 + $0x50] sm:$0xff] }
  0x9a   : > { %v402_v24 = vpack.c.bf16 %v396_v23, %v394_v22  ;;  %v665_v22 = vld [vmem:[%s1101_s8 + $0x58] sm:$0xff] }
  0x9b   : > { %v675_v23 = vpack.c.bf16 %v665_v22, %v664_v21 }
  0x9c   : > { %767 = vmatmul.msk.bf16.vlgmr.msra.gmra.mxu3 %vm414_vm2, %v402_v24  ;;  %v662_v24 = vld [vmem:[%s1101_s8 + $0x40] sm:$0xff] }
  0x9f   : > { %v398_v25 = vpop.f32.mrf.mxu0 }
  0xa0   : > { %v399_v26 = vadd.f32 %v845_v19, %v398_v25  ;;  %v676_v19 = vpack.c.bf16 %v667_v18, %v666_v16  ;;  %v663_v25 = vld [vmem:[%s1101_s8 + $0x48] sm:$0xff] }
  0xa2   : > { %v403_v28 = vpack.c.bf16 %v399_v26, %v399_v26  ;;  %683 = vmatpush.bf16.msra.mxu1 %v676_v19 }
  0xa6   : > { %684 = vmatpush.bf16.msra.mxu1 %v675_v23 }
  0xa7   : > { %v400_v27 = vpop.f32.mrf.mxu0 }
  0xac   : > { %768 = vmatmul.msk.bf16.gmra.mxu3 %vm414_vm2, %v403_v28  ;;  %v674_v28 = vpack.c.bf16 %v663_v25, %v662_v24 }
  0xae   : > { %685 = vmatpush.bf16.msra.mxu1 %v674_v28 }
 0x11f   : > { %v430_v33 = vpop.f32.mrf.mxu3 }
 0x120   : > { %v431_v35 = vadd.f32 %v846_v34, %v430_v33 }
 0x122   : > { %v439_v38 = vmul.f32 0.17677669, %v431_v35  ;;  %v673_v35 = vpack.c.bf16 %v661_v32, %v660_v31 }
 0x124   : > { %686 = vmatpush.bf16.msra.mxu1 %v673_v35 }
 0x127   : > { %v432_v36 = vpop.f32.mrf.mxu3 }
 0x128   : > { %v433_v37 = vadd.f32 %v846_v34, %v432_v36 }
 0x12a   : > { %v440_v39 = vmul.f32 0.17677669, %v433_v37 }
 0x12c   : > { %v442_v40 = vpack.c.bf16 %v440_v39, %v439_v38  ;;  %v658_v39 = vld [vmem:[%s1101_s8 + $0x20] sm:$0xff] }
 0x12e   : > { %516 = vmatmul.bf16.vlgmr.msra.gmra.mxu2 %v442_v40  ;;  %v659_v40 = vld [vmem:[%s1101_s8 + $0x28] sm:$0xff] }
 0x12f   : > { %v435_v41 = vpop.f32.mrf.mxu3 }
 0x130   : > { %v436_v42 = vadd.f32 %v846_v34, %v435_v41  ;;  %v672_v41 = vpack.c.bf16 %v659_v40, %v658_v39 }
 0x132   : > { %v441_v43 = vmul.f32 0.17677669, %v436_v42  ;;  %687 = vmatpush.bf16.msra.mxu1 %v672_v41  ;;  %v656_v42 = vld [vmem:[%s1101_s8 + $0x10] sm:$0xff] }
 0x134   : > { %v443_v45 = vpack.c.bf16 %v441_v43, %v441_v43  ;;  %v657_v43 = vld [vmem:[%s1101_s8 + $0x18] sm:$0xff] }
 0x137   : > { %v437_v44 = vpop.f32.mrf.mxu3 }
 0x138   : > { %v671_v44 = vpack.c.bf16 %v657_v43, %v656_v42 }
 0x13a   : > { %688 = vmatpush.bf16.msra.mxu1 %v671_v44 }
 0x13e   : > { %521 = vmatmul.bf16.gmra.mxu2 %v443_v45  ;;  %v654_v45 = vld [vmem:[%s1101_s8] sm:$0xff] }
 0x13f   : > { %v670_v47 = vpack.c.bf16 %v655_v46, %v654_v45 }
 0x141   : > { %689 = vmatpush.bf16.msra.mxu1 %v670_v47 }
 0x1b1   : > { %v517_v51 = vpop.f32.mrf.mxu2 }
 0x1b2   : > { %v527_v53 = vsel %vm526_vm3, %v517_v51, -inf }
 0x1b3   : > { %528 = vmax.xlane.f32.xlu0 %v527_v53 }
 0x1b9   : > { %v519_v54 = vpop.f32.mrf.mxu2 }
 0x1ba   : > { %v530_v55 = vsel %vm526_vm3, %v519_v54, -inf }
 0x1bb   : > { %531 = vmax.xlane.f32.xlu0 %v530_v55 }
 0x1c1   : > { %v522_v56 = vpop.f32.mrf.mxu2 }
 0x1c2   : > { %v533_v57 = vsel %vm526_vm3, %v522_v56, -inf }
 0x1c3   : > { %534 = vmax.xlane.f32.xlu1 %v533_v57 }
 0x1c9   : > { %v524_v58 = vpop.f32.mrf.mxu2 }
 0x226   : > { %v529_v63 = vpop.xlane.xlu0 %528 }
 0x227   : > { %v536_v0 = vsub.f32 %v517_v51, %v529_v63 }
 0x229   : > { %v539_v1 = vmul.f32 1.442695, %v536_v0 }
 0x22b   : > { %848 = vpow2.f32 %v539_v1 }
 0x22e   : > { %v532_v2 = vpop.xlane.xlu0 %531 }
 0x22f   : > { %v537_v3 = vsub.f32 %v519_v54, %v532_v2  ;;  %v847_v54 = vld [vmem:[%s1102_s9] ss:$0 sm:$0xff] }
 0x231   : > { %v849_v4 = vpop.eup %848  ;;  %v541_v5 = vmul.f32 1.442695, %v537_v3 }
 0x232   : > { %801 = vmatmul.msk.f32.vlgmr.msrb.gmra.mxu3 %vm526_vm3, %v849_v4 }
 0x233   : > { %850 = vpow2.f32 %v541_v5 }
 0x236   : > { %v535_v6 = vpop.xlane.xlu1 %534 }
 0x237   : > { %v538_v7 = vsub.f32 %v522_v56, %v535_v6 }
 0x239   : > { %v851_v8 = vpop.eup %850  ;;  %v543_v9 = vmul.f32 1.442695, %v538_v7 }
 0x23a   : > { %802 = vmatmul.msk.f32.gmra.mxu3 %vm526_vm3, %v851_v8 }
 0x23b   : > { %852 = vpow2.f32 %v543_v9 }
 0x241   : > { %v853_v10 = vpop.eup %852 }
 0x242   : > { %803 = vmatmul.msk.f32.gmra.mxu3 %vm526_vm3, %v853_v10 }
 0x2b5   : > { %v579_v13 = vpop.f32.mrf.mxu3 }
 0x2b6   : > { %854 = vrcp.f32 %v579_v13 }
 0x2bc   : > { %v855_v26 = vpop.eup %854 }
 0x2bd   : > { %v582_v20 = vpop.f32.mrf.mxu3  ;;  %v591_v29 = vmul.f32 %v855_v26, %v849_v4 }
 0x2be   : > { %856 = vrcp.f32 %v582_v20 }
 0x2c4   : > { %v857_v27 = vpop.eup %856 }
 0x2c5   : > { %v592_v30 = vmul.f32 %v857_v27, %v851_v8  ;;  %v585_v33 = vpop.f32.mrf.mxu3 }
 0x2c6   : > { %858 = vrcp.f32 %v585_v33 }
 0x2c7   : > { %v594_v34 = vpack.c.bf16 %v592_v30, %v591_v29 }
 0x2c9   : > { %820 = vmatmul.msk.bf16.vlgmr.msrb.gmra.mxu0 %vm526_vm3, %v594_v34 }
 0x2cc   : > { %v859_v36 = vpop.eup %858 }
 0x2cd   : > { %v593_v37 = vmul.f32 %v859_v36, %v853_v10 }
 0x2cf   : > { %v595_v38 = vpack.c.bf16 %v593_v37, %v593_v37 }
 0x2d9   : > { %821 = vmatmul.msk.bf16.gmra.mxu0 %vm526_vm3, %v595_v38 }
 0x346   : > { %v643_v48 = vpop.f32.mrf.mxu0 }
 0x34e   : > { %v645_v49 = vpop.f32.mrf.mxu0 }
 0x34f   : > { %v652_v50 = vpack.c.bf16 %v645_v49, %v643_v48 }
 0x351   : > { %690 = vmatmul.bf16.vlgmr.msra.gmra.mxu1 %v652_v50 }
 0x356   : > { %v648_v51 = vpop.f32.mrf.mxu0 }
 0x357   : > { %v653_v53 = vpack.c.bf16 %v648_v51, %v648_v51 }
 0x35e   : > { %v650_v52 = vpop.f32.mrf.mxu0 }
 0x361   : > { %695 = vmatmul.bf16.gmra.mxu1 %v653_v53 }
 0x3ce   : > { %v691_v55 = vpop.f32.mrf.mxu1 }
 0x3cf   : > { %v692_v56 = vadd.f32 %v847_v54, %v691_v55 }
 0x3d1   : > { %700 = vst.msk [vmem:[%s359_s26] sm:$0xff] %vm526_vm3, %v692_v56 }
 0x3d6   : > { %v693_v57 = vpop.f32.mrf.mxu1 }
 0x3d7   : > { %v694_v58 = vadd.f32 %v847_v54, %v693_v57 }
 0x3d9   : > { %701 = vst.msk [vmem:[%s359_s26 + $0x8] sm:$0xff] %vm526_vm3, %v694_v58 }
 0x3de   : > { %v696_v59 = vpop.f32.mrf.mxu1 }
 0x3df   : > { %v697_v60 = vadd.f32 %v847_v54, %v696_v59 }
 0x3e1   : > { %702 = vst.msk [vmem:[%s359_s26 + $0x10] sm:$0xff] %vm526_vm3, %v697_v60 }
 0x3e6   : > { %v698_v61 = vpop.f32.mrf.mxu1 }
 0x3e7 PF: > { %s20_s13 = sadd.s32 1, %s866_s13  }
 0x3e8   : > { %p17_p4 = scmp.ge.s32.totalorder %s20_s13, 4  }
 0x3ea   :  { %19 = sbr.rel (!%p17_p4) target bundleno = 1 (0x1), region = 90 }

</bundles_post_ra>
